<compile_context>
chip_gen: v7x
topology: tpu7x:2x2x1
jax: 0.10.0
libtpu: 0.0.40
codegen_flags: <defaults>
</compile_context>

<pallas_src>
import math
import jax
import jax.numpy as jnp
from jax import lax
from jax.experimental import pallas as pl
from jax.experimental.pallas import tpu as pltpu


def _round_up(n, m):
    return (n + m - 1) // m * m


def _qfc_kernel(xa_ref, w1_ref, b1_ref, w2_ref, b2_ref, w3_ref, b3_ref,
                out_ref):
    # In-kernel bf16 cast of the activations (f32 tile comes straight from HBM).
    xa = xa_ref[...].astype(jnp.bfloat16)

    # fc1: single matmul over the concatenated (obs+act) contraction dim.
    y1 = jnp.dot(xa, w1_ref[...],
                 preferred_element_type=jnp.float32) + b1_ref[...]
    y1 = jnp.maximum(y1, 0.0)                                   # f32 ReLU

    # fc2
    y2 = jnp.dot(y1.astype(jnp.bfloat16), w2_ref[...],
                 preferred_element_type=jnp.float32) + b2_ref[...]
    y2 = jnp.maximum(y2, 0.0)

    # fc3 (256 -> 1): (1, 256) x (TB, 256)^T contraction on the MXU -> a
    # lane-dense (1, TB) result, no cross-lane reduce or relayout needed.
    q = lax.dot_general(w3_ref[...], y2.astype(jnp.bfloat16),
                        dimension_numbers=(((1,), (1,)), ((), ())),
                        preferred_element_type=jnp.float32)
    out_ref[...] = (q + b3_ref[0]).astype(out_ref.dtype)


def q_fc_forward(x, a, params, *, block_b=4096):
    """x: [B, obs_size] f32, a: [B, action_size] f32 -> q: [B] f32."""
    assert block_b % 128 == 0, "block_b must be a multiple of 128 (lane width)"
    w1, b1, w2, b2, w3, b3 = params

    B = x.shape[0]
    K = x.shape[1] + a.shape[1]          # obs + action
    H = w2.shape[0]

    # Batch tile: multiple of 128 lanes for a full, unmasked (1, TB) store.
    B128 = _round_up(B, 128)
    TB = min(block_b, B128)
    # v7x megacore: guarantee >= 2 grid steps when a single tile would cover
    # the whole batch (so both TensorCores run under dimension_semantics).
    if B128 <= TB and B128 >= 2 * 128:
        TB = _round_up(B128 // 2, 128)
    B_pad = _round_up(B, TB)
    grid = (B_pad // TB,)

    # torch.cat((x, a), 1) done here (cheap, fused by XLA).  No wrapper-side
    # dtype cast: the kernel reads f32 and casts to bf16 on the VPU.
    xa = jnp.concatenate([x, a], axis=1).astype(jnp.float32)
    if B_pad != B:
        xa = jnp.pad(xa, ((0, B_pad - B), (0, 0)))

    def const(shape):
        # Constant index map -> block stays VMEM-resident across grid steps.
        return pl.BlockSpec(shape, lambda i: (0,) * len(shape))

    out = pl.pallas_call(
        _qfc_kernel,
        out_shape=jax.ShapeDtypeStruct((1, B_pad), jnp.float32),
        grid=grid,
        in_specs=[
            pl.BlockSpec((TB, K), lambda i: (i, 0)),            # [x|a] tile
            const((K, H)),                                      # w1 (resident)
            const((1, H)),                                      # b1
            const((H, H)),                                      # w2 (resident)
            const((1, H)),                                      # b2
            const((1, H)),                                      # w3 row
            pl.BlockSpec(memory_space=pltpu.MemorySpace.SMEM),  # b3 scalar
        ],
        out_specs=pl.BlockSpec((1, TB), lambda i: (0, i)),      # lane-dense out
        compiler_params=pltpu.CompilerParams(
            dimension_semantics=("parallel",),
            vmem_limit_bytes=64 << 20),
    )(xa, w1, b1, w2, b2, w3, b3)
    return out.reshape(-1)[:B]


def init_params(key, obs_size, action_size, hidden=256):
    """torch.nn.Linear-style U(-1/sqrt(fan_in), +1/sqrt(fan_in)) init.

    Matmul weights are stored bf16 (f32 accumulation happens in-kernel);
    biases stay f32; the fc3 bias is a 1-element f32 vector that lives in SMEM.
    """
    def linear(k, fan_in, fan_out):
        kw, kb = jax.random.split(k)
        bound = 1.0 / math.sqrt(fan_in)
        w = jax.random.uniform(kw, (fan_in, fan_out), jnp.float32, -bound, bound)
        b = jax.random.uniform(kb, (1, fan_out), jnp.float32, -bound, bound)
        return w, b

    k1, k2, k3 = jax.random.split(key, 3)
    w1, b1 = linear(k1, obs_size + action_size, hidden)
    w2, b2 = linear(k2, hidden, hidden)
    w3, b3 = linear(k3, hidden, 1)

    return (w1.astype(jnp.bfloat16), b1,
            w2.astype(jnp.bfloat16), b2,
            w3.T.astype(jnp.bfloat16),     # (1, hidden) row for fc3
            b3.reshape(-1))                # (1,) scalar -> SMEM


def q_fc_reference(x, a, params):
    """Pure-JAX f32 reference with the exact PyTorch forward structure."""
    w1, b1, w2, b2, w3, b3 = params
    xa = jnp.concatenate([x, a], axis=1).astype(jnp.float32)
    y1 = jnp.maximum(xa @ w1.astype(jnp.float32) + b1, 0.0)
    y2 = jnp.maximum(y1 @ w2.astype(jnp.float32) + b2, 0.0)
    return (y2 @ w3.astype(jnp.float32).T + b3).reshape(-1)


if __name__ == "__main__":
    key = jax.random.PRNGKey(0)
    k_p, k_x, k_a = jax.random.split(key, 3)

    batch, obs_size, action_size = 2, 16, 4
    params = init_params(k_p, obs_size, action_size)
    x = jax.random.normal(k_x, (batch, obs_size), jnp.float32)
    a = jax.random.normal(k_a, (batch, action_size), jnp.float32)

    y = q_fc_forward(x, a, params)
    jax.block_until_ready(y)

    y_ref = q_fc_reference(x, a, params)
    assert y.shape == (batch,)
    # bf16 matmul operands + f32 accumulation vs. a pure-f32 reference.
    assert jnp.allclose(y, y_ref, atol=2e-2, rtol=2e-2), (y, y_ref)

    print("KERNEL_OK")
</pallas_src>

<mosaic_0001>
module attributes {stable_mosaic.version = 11 : i64} {
  func.func @_qfc_kernel(%arg0: i32, %arg1: memref<128x20xf32, #tpu.memory_space<vmem>>, %arg2: memref<20x256xbf16, #tpu.memory_space<vmem>>, %arg3: memref<1x256xf32, #tpu.memory_space<vmem>>, %arg4: memref<256x256xbf16, #tpu.memory_space<vmem>>, %arg5: memref<1x256xf32, #tpu.memory_space<vmem>>, %arg6: memref<1x256xbf16, #tpu.memory_space<vmem>>, %arg7: memref<1xf32, #tpu.memory_space<smem>>, %arg8: memref<1x128xf32, #tpu.memory_space<vmem>>) attributes {dimension_semantics = [#tpu.dimension_semantics<parallel>], iteration_bounds = array<i64: 1>, scalar_prefetch = 0 : i64, scratch_operands = 0 : i64, tpu.core_type = #tpu.core_type<tc>, window_params = [{transform_indices = @transform_0, window_bounds = array<i64: 128, 20>}, {pipeline_mode = #tpu.pipeline_mode<synchronous>, transform_indices = @transform_1, window_bounds = array<i64: 20, 256>}, {pipeline_mode = #tpu.pipeline_mode<synchronous>, transform_indices = @transform_2, window_bounds = array<i64: 1, 256>}, {pipeline_mode = #tpu.pipeline_mode<synchronous>, transform_indices = @transform_3, window_bounds = array<i64: 256, 256>}, {pipeline_mode = #tpu.pipeline_mode<synchronous>, transform_indices = @transform_4, window_bounds = array<i64: 1, 256>}, {pipeline_mode = #tpu.pipeline_mode<synchronous>, transform_indices = @transform_5, window_bounds = array<i64: 1, 256>}, {transform_indices = @transform_6, window_bounds = array<i64: 1>}, {transform_indices = @transform_7, window_bounds = array<i64: 1, 128>}]} {
    %c0 = arith.constant 0 : index
    %c0_0 = arith.constant 0 : index
    %0 = vector.load %arg1[%c0, %c0_0] : memref<128x20xf32, #tpu.memory_space<vmem>>, vector<128x20xf32>
    %1 = arith.truncf %0 : vector<128x20xf32> to vector<128x20xbf16>
    %c0_1 = arith.constant 0 : index
    %c0_2 = arith.constant 0 : index
    %2 = vector.load %arg2[%c0_1, %c0_2] : memref<20x256xbf16, #tpu.memory_space<vmem>>, vector<20x256xbf16>
    %cst = arith.constant dense<0.000000e+00> : vector<128x256xf32>
    %3 = tpu.matmul %1, %2, %cst {dimension_numbers = #tpu.dot_dimension_numbers<[1], [0], [0], [1], [0, 0, 1, 1], [], []>} : vector<128x20xbf16>, vector<20x256xbf16>, vector<128x256xf32> -> vector<128x256xf32>
    %c0_3 = arith.constant 0 : index
    %c0_4 = arith.constant 0 : index
    %4 = vector.load %arg3[%c0_3, %c0_4] : memref<1x256xf32, #tpu.memory_space<vmem>>, vector<1x256xf32>
    %5 = vector.broadcast %4 : vector<1x256xf32> to vector<128x256xf32>
    %6 = arith.addf %3, %5 : vector<128x256xf32>
    %cst_5 = arith.constant 0.000000e+00 : f32
    %7 = vector.broadcast %cst_5 : f32 to vector<128x256xf32>
    %8 = arith.maximumf %6, %7 : vector<128x256xf32>
    %9 = arith.truncf %8 : vector<128x256xf32> to vector<128x256xbf16>
    %c0_6 = arith.constant 0 : index
    %c0_7 = arith.constant 0 : index
    %10 = vector.load %arg4[%c0_6, %c0_7] : memref<256x256xbf16, #tpu.memory_space<vmem>>, vector<256x256xbf16>
    %cst_8 = arith.constant dense<0.000000e+00> : vector<128x256xf32>
    %11 = tpu.matmul %9, %10, %cst_8 {dimension_numbers = #tpu.dot_dimension_numbers<[1], [0], [0], [1], [0, 0, 1, 1], [], []>} : vector<128x256xbf16>, vector<256x256xbf16>, vector<128x256xf32> -> vector<128x256xf32>
    %c0_9 = arith.constant 0 : index
    %c0_10 = arith.constant 0 : index
    %12 = vector.load %arg5[%c0_9, %c0_10] : memref<1x256xf32, #tpu.memory_space<vmem>>, vector<1x256xf32>
    %13 = vector.broadcast %12 : vector<1x256xf32> to vector<128x256xf32>
    %14 = arith.addf %11, %13 : vector<128x256xf32>
    %cst_11 = arith.constant 0.000000e+00 : f32
    %15 = vector.broadcast %cst_11 : f32 to vector<128x256xf32>
    %16 = arith.maximumf %14, %15 : vector<128x256xf32>
    %c0_12 = arith.constant 0 : index
    %c0_13 = arith.constant 0 : index
    %17 = vector.load %arg6[%c0_12, %c0_13] : memref<1x256xbf16, #tpu.memory_space<vmem>>, vector<1x256xbf16>
    %18 = arith.truncf %16 : vector<128x256xf32> to vector<128x256xbf16>
    %cst_14 = arith.constant dense<0.000000e+00> : vector<1x128xf32>
    %19 = tpu.matmul %17, %18, %cst_14 {dimension_numbers = #tpu.dot_dimension_numbers<[1], [1], [0], [0], [0, 0, 1, 0], [], []>} : vector<1x256xbf16>, vector<128x256xbf16>, vector<1x128xf32> -> vector<1x128xf32>
    %c0_15 = arith.constant 0 : index
    %20 = memref.load %arg7[%c0_15] : memref<1xf32, #tpu.memory_space<smem>>
    %21 = vector.broadcast %20 : f32 to vector<1x128xf32>
    %22 = arith.addf %19, %21 : vector<1x128xf32>
    %c0_16 = arith.constant 0 : index
    %c0_17 = arith.constant 0 : index
    %23 = vector.load %arg8[%c0_16, %c0_17] : memref<1x128xf32, #tpu.memory_space<vmem>>, vector<1x128xf32>
    tpu.vector_store %arg8[%c0_16, %c0_17], %22 {strides = array<i32>} : memref<1x128xf32, #tpu.memory_space<vmem>>, vector<1x128xf32>,
    return
  }
  func.func @transform_0(%arg0: i32) -> (i32, i32) {
    %c0_i32 = arith.constant 0 : i32
    %c0_i32_0 = arith.constant 0 : i32
    return %arg0, %c0_i32 : i32, i32
  }
  func.func @transform_1(%arg0: i32) -> (i32, i32) {
    %c0_i32 = arith.constant 0 : i32
    %c0_i32_0 = arith.constant 0 : i32
    %c0_i32_1 = arith.constant 0 : i32
    return %c0_i32, %c0_i32_0 : i32, i32
  }
  func.func @transform_2(%arg0: i32) -> (i32, i32) {
    %c0_i32 = arith.constant 0 : i32
    %c0_i32_0 = arith.constant 0 : i32
    %c0_i32_1 = arith.constant 0 : i32
    return %c0_i32, %c0_i32_0 : i32, i32
  }
  func.func @transform_3(%arg0: i32) -> (i32, i32) {
    %c0_i32 = arith.constant 0 : i32
    %c0_i32_0 = arith.constant 0 : i32
    %c0_i32_1 = arith.constant 0 : i32
    return %c0_i32, %c0_i32_0 : i32, i32
  }
  func.func @transform_4(%arg0: i32) -> (i32, i32) {
    %c0_i32 = arith.constant 0 : i32
    %c0_i32_0 = arith.constant 0 : i32
    %c0_i32_1 = arith.constant 0 : i32
    return %c0_i32, %c0_i32_0 : i32, i32
  }
  func.func @transform_5(%arg0: i32) -> (i32, i32) {
    %c0_i32 = arith.constant 0 : i32
    %c0_i32_0 = arith.constant 0 : i32
    %c0_i32_1 = arith.constant 0 : i32
    return %c0_i32, %c0_i32_0 : i32, i32
  }
  func.func @transform_6(%arg0: i32) -> i32 {
    %c0_i32 = arith.constant 0 : i32
    %c0_i32_0 = arith.constant 0 : i32
    return %c0_i32 : i32
  }
  func.func @transform_7(%arg0: i32) -> (i32, i32) {
    %c0_i32 = arith.constant 0 : i32
    %c0_i32_0 = arith.constant 0 : i32
    return %c0_i32, %arg0 : i32, i32
  }
}

</mosaic_0001>

<bundles_post_ra>
// kernel: tpu_custom_call.1
= control target key start
LH: loop header
LB: loop body
LE: loop exit
PB: predicated region body
PF: predicated region fallthrough
CT: control target
= control target key end

     0   :  { %13 = vsyncpa [#allocation4], 0  ;;  %s1345_s0 = inlined_call_operand.hbm [shape: f32[128,20], index: 0, kind: input, shape index: {}]   ;;  %s1346_s1 = inlined_call_operand.hbm [shape: bf16[20,256], index: 1, kind: input, shape index: {}]   ;;  %s1347_s2 = inlined_call_operand.hbm [shape: f32[1,256], index: 2, kind: input, shape index: {}]   ;;  %s1348_s3 = inlined_call_operand.hbm [shape: bf16[256,256], index: 3, kind: input, shape index: {}]   ;;  %s1349_s4 = inlined_call_operand.hbm [shape: f32[1,256], index: 4, kind: input, shape index: {}]   ;;  %s1350_s5 = inlined_call_operand.hbm [shape: bf16[1,256], index: 5, kind: input, shape index: {}]   ;;  %s1351_s6 = inlined_call_operand.<no memory space> [shape: f32[1], index: 6, kind: input, shape index: {}]   ;;  %s1352_s7 = inlined_call_operand.hbm [shape: f32[1,128], index: 7, kind: output, shape index: {}]  }
   0x1   :  { %14 = vsyncpa [#allocation7], 0 }
   0x2   :  { %15 = vsyncpa [#allocation10], 0 }
   0x3   :  { %16 = vsyncpa [#allocation13], 0 }
   0x4   :  { %17 = vsyncpa [#allocation5], 0  ;;  %s1078_s24 = smov [#allocation6]   ;;  %s1079_s26 = smov [#allocation9]  }
   0x5   :  { %s35_s25 = sshll.u32 %s1078_s24, 4  ;;  %s57_s27 = sshll.u32 %s1079_s26, 4  ;;  %s36_s25 = int_to_ptr.vmem [resolvable:$true] %s35_s25  ;;  %s1129_s27 = int_to_ptr.vmem [resolvable:$true] %s57_s27 }
   0x6   :  { %s914_s30 = scalar_lea.hbm %s1346_s1, 384 }
   0x7   :  { %p915_p0 = scmp.ne.s32.totalorder %s1346_s1, %s914_s30  ;;  %p918_p1 = scmp.lt.u32.totalorder %s914_s30, %s1346_s1 }
   0x9   :  { %p920_p2 = pnand %p918_p1, %p915_p0 }
   0xb   :  { %923 = shalt.err (!%p920_p2)
}
   0xc   :  { %s924_s12 = scalar_lea.vmem %s36_s25, 384  ;;  %p929_p4 = scmp.lt.s32.totalorder %s36_s25, %s36_s25 }
   0xd   :  { %p925_p3 = scmp.ne.s32.totalorder %s36_s25, %s924_s12  ;;  %p930_p5 = scmp.lt.s32.totalorder %s924_s12, %s924_s12 }
   0xf   :  { %p931_p6 = por %p930_p5, %p929_p4 }
  0x11   :  { %p932_p7 = pnand %p931_p6, %p925_p3 }
  0x13   :  { %935 = shalt.err (!%p932_p7)
}
  0x14   :  { %s1080_s13 = smov 128   ;;  %s1081_s14 = smov 8  }
  0x15   :  { %41 = dma.hbm_to_vmem [thread:$0]  %s1346_s1, 384, %s36_s25, [#allocation7], %s1080_s13, %s1080_s13, %s1081_s14  }
  0x16   :  { %s936_s19 = scalar_lea.hbm %s1348_s3, 4096 }
  0x17   :  { %p937_p8 = scmp.ne.s32.totalorder %s1348_s3, %s936_s19  ;;  %p940_p9 = scmp.lt.u32.totalorder %s936_s19, %s1348_s3 }
  0x19   :  { %p942_p10 = pnand %p940_p9, %p937_p8 }
  0x1b   :  { %945 = shalt.err (!%p942_p10)
}
  0x1c   :  { %s946_s24 = scalar_lea.vmem %s1129_s27, 4096  ;;  %p951_p12 = scmp.lt.s32.totalorder %s1129_s27, %s1129_s27 }
  0x1d   :  { %p947_p11 = scmp.ne.s32.totalorder %s1129_s27, %s946_s24  ;;  %p952_p13 = scmp.lt.s32.totalorder %s946_s24, %s946_s24 }
  0x1f   :  { %p953_p0 = por %p952_p13, %p951_p12 }
  0x21   :  { %p954_p1 = pnand %p953_p0, %p947_p11 }
  0x23   :  { %957 = shalt.err (!%p954_p1)
}
  0x24   :  { %63 = dma.hbm_to_vmem [thread:$0]  %s1348_s3, 4096, %s1129_s27, [#allocation10], %s1080_s13, %s1080_s13, %s1081_s14  }
  0x25   :  { %s1082_s26 = smov [#allocation3]   ;;  %s1083_s29 = smov [#allocation8]  }
  0x26   :  { %s23_s28 = sshll.u32 %s1082_s26, 4  ;;  %s48_s30 = sshll.u32 %s1083_s29, 4  ;;  %s24_s28 = int_to_ptr.vmem [resolvable:$true] %s23_s28  ;;  %s49_s30 = int_to_ptr.vmem [resolvable:$true] %s48_s30 }
  0x27   :  { %s958_s10 = scalar_lea.hbm %s1345_s0, 2048 }
  0x28   :  { %p959_p2 = scmp.ne.s32.totalorder %s1345_s0, %s958_s10  ;;  %p962_p3 = scmp.lt.u32.totalorder %s958_s10, %s1345_s0 }
  0x2a   :  { %p964_p4 = pnand %p962_p3, %p959_p2 }
  0x2c   :  { %967 = shalt.err (!%p964_p4)
}
  0x2d   :  { %s968_s3 = scalar_lea.vmem %s24_s28, 2048  ;;  %p973_p6 = scmp.lt.s32.totalorder %s24_s28, %s24_s28 }
  0x2e   :  { %p969_p5 = scmp.ne.s32.totalorder %s24_s28, %s968_s3  ;;  %p974_p7 = scmp.lt.s32.totalorder %s968_s3, %s968_s3 }
  0x30   :  { %p975_p8 = por %p974_p7, %p973_p6 }
  0x32   :  { %p976_p9 = pnand %p975_p8, %p969_p5 }
  0x34   :  { %979 = shalt.err (!%p976_p9)
}
  0x35   :  { %29 = dma.hbm_to_vmem [thread:$0]  %s1345_s0, 2048, %s24_s28, [#allocation4], %s1080_s13, %s1080_s13, %s1081_s14  }
  0x36   :  { %s980_s20 = scalar_lea.hbm %s1347_s2, 32 }
  0x37   :  { %p981_p10 = scmp.ne.s32.totalorder %s1347_s2, %s980_s20  ;;  %p984_p11 = scmp.lt.u32.totalorder %s980_s20, %s1347_s2 }
  0x39   :  { %p986_p12 = pnand %p984_p11, %p981_p10 }
  0x3b   :  { %989 = shalt.err (!%p986_p12)
}
  0x3c   :  { %s990_s1 = scalar_lea.vmem %s49_s30, 32  ;;  %p995_p0 = scmp.lt.s32.totalorder %s49_s30, %s49_s30 }
  0x3d   :  { %p991_p13 = scmp.ne.s32.totalorder %s49_s30, %s990_s1  ;;  %p996_p1 = scmp.lt.s32.totalorder %s990_s1, %s990_s1 }
  0x3f   :  { %p997_p2 = por %p996_p1, %p995_p0 }
  0x41   :  { %p998_p3 = pnand %p997_p2, %p991_p13 }
  0x43   :  { %1001 = shalt.err (!%p998_p3)
}
  0x44   :  { %51 = dma.hbm_to_vmem [thread:$0]  %s1347_s2, 32, %s49_s30, [#allocation7]  }
  0x45   :  { %s1084_s14 = smov [#allocation11]   ;;  %s1085_s26 = smov [#allocation12]  }
  0x46   :  { %s70_s25 = sshll.u32 %s1084_s14, 4  ;;  %s80_s28 = sshll.u32 %s1085_s26, 4  ;;  %s71_s25 = int_to_ptr.vmem [resolvable:$true] %s70_s25  ;;  %s81_s28 = int_to_ptr.vmem [resolvable:$true] %s80_s28 }
  0x47   :  { %s1002_s9 = scalar_lea.hbm %s1349_s4, 32 }
  0x48   :  { %p1003_p4 = scmp.ne.s32.totalorder %s1349_s4, %s1002_s9  ;;  %p1006_p5 = scmp.lt.u32.totalorder %s1002_s9, %s1349_s4 }
  0x4a   :  { %p1008_p6 = pnand %p1006_p5, %p1003_p4 }
  0x4c   :  { %1011 = shalt.err (!%p1008_p6)
}
  0x4d   :  { %s1012_s2 = scalar_lea.vmem %s71_s25, 32  ;;  %p1017_p8 = scmp.lt.s32.totalorder %s71_s25, %s71_s25 }
  0x4e   :  { %p1013_p7 = scmp.ne.s32.totalorder %s71_s25, %s1012_s2  ;;  %p1018_p9 = scmp.lt.s32.totalorder %s1012_s2, %s1012_s2 }
  0x50   :  { %p1019_p10 = por %p1018_p9, %p1017_p8 }
  0x52   :  { %p1020_p11 = pnand %p1019_p10, %p1013_p7 }
  0x54   :  { %1023 = shalt.err (!%p1020_p11)
}
  0x55   :  { %73 = dma.hbm_to_vmem [thread:$0]  %s1349_s4, 32, %s71_s25, [#allocation10]  }
  0x56   :  { %s1024_s17 = scalar_lea.hbm %s1350_s5, 32 }
  0x57   :  { %p1025_p12 = scmp.ne.s32.totalorder %s1350_s5, %s1024_s17  ;;  %p1028_p13 = scmp.lt.u32.totalorder %s1024_s17, %s1350_s5 }
  0x59   :  { %p1030_p0 = pnand %p1028_p13, %p1025_p12 }
  0x5b   :  { %1033 = shalt.err (!%p1030_p0)
}
  0x5c   :  { %s1034_s22 = scalar_lea.vmem %s81_s28, 32  ;;  %p1039_p2 = scmp.lt.s32.totalorder %s81_s28, %s81_s28 }
  0x5d   :  { %p1035_p1 = scmp.ne.s32.totalorder %s81_s28, %s1034_s22  ;;  %p1040_p3 = scmp.lt.s32.totalorder %s1034_s22, %s1034_s22 }
  0x5f   :  { %p1041_p4 = por %p1040_p3, %p1039_p2 }
  0x61   :  { %p1042_p5 = pnand %p1041_p4, %p1035_p1 }
  0x63   :  { %1045 = shalt.err (!%p1042_p5)
}
  0x64   :  { %83 = dma.hbm_to_vmem [thread:$0]  %s1350_s5, 32, %s81_s28, [#allocation13]  }
  0x65   :  { %1068 = dma.done.wait [#allocation4], 2048  }
  0x66   :  { %1069 = vsyncadd [#allocation4], 4294965248 }
  0x67   :  { %1070 = dma.done.wait [#allocation7], 416  }
  0x68   :  { %1071 = vsyncadd [#allocation7], 4294966880 }
  0x69   :  { %1072 = dma.done.wait [#allocation10], 4128  }
  0x6a   :  { %1073 = vsyncadd [#allocation10], 4294963168 }
  0x6b   :  { %1074 = dma.done.wait [#allocation13], 32  }
  0x6c   :  { %1075 = vsyncadd [#allocation13], 4294967264  ;;  %v1086_v0 = vmov 0   ;;  %v861_v1 = vld [vmem:[#allocation6 + $0x4] ss:$8 sps:$4 sm:$0xff]   ;;  %vm184_vm0 = vcmask 1041408   ;;  %v134_v63 = vlaneseq }
  0x6d   :  { %223 = vmatprep.mubr.bf16.mxu0 %v1086_v0  ;;  %v863_v2 = vld [vmem:[#allocation6] ss:$8 sps:$4 sm:$0xff]   ;;  %v131_v3 = vld [vmem:[#allocation6 + $0x10] sm:$0x33]  ;;  %191 = vmatprep.subr.bf16.mxu0 %v861_v1  ;;  %vm159_vm1 = vcmask 162816   ;;  %v108_v14 = vld [vmem:[#allocation3 + $0x18] sm:$0xff] }
  0x6e   :  { %v807_v4 = vcombine.high %v131_v3, %v131_v3  ;;  %v806_v5 = vcombine.low %v131_v3, %v131_v3  ;;  %192 = vmatpush1.bf16.msra.mxu0 %v863_v2  ;;  %v105_v6 = vld [vmem:[#allocation3] sm:$0xff]  ;;  %v106_v7 = vld [vmem:[#allocation3 + $0x8] sm:$0xff]  ;;  %v107_v12 = vld [vmem:[#allocation3 + $0x10] sm:$0xff]  ;;  %v1233_v1 = vshrl.u32 %v134_v63, 7  ;;  %s1088_s1 = smov [#allocation14]  }
  0x6f   :  { %v121_v9 = vpack.c.bf16 %v106_v7, %v105_v6  ;;  %v866_v10 = vld [vmem:[#allocation9 + $0x4] ss:$8 sps:$4 sm:$0xff]   ;;  %v868_v11 = vld [vmem:[#allocation9] ss:$8 sps:$4 sm:$0xff]   ;;  %v869_v13 = vld [vmem:[#allocation9 + $0x14] ss:$8 sps:$4 sm:$0xff]   ;;  %v122_v17 = vpack.c.bf16 %v108_v14, %v107_v12 }
  0x70   :  { %808 = vmatprep.subr.msk.bf16.mxu0 %vm184_vm0, %v807_v4  ;;  %v186_v8 = vsel %vm184_vm0, %v806_v5, 0  ;;  %556 = vmatprep.subr.bf16.mxu1 %v866_v10  ;;  %v871_v15 = vld [vmem:[#allocation9 + $0x10] ss:$8 sps:$4 sm:$0xff]   ;;  %v872_v16 = vld [vmem:[#allocation9 + $0x24] ss:$8 sps:$4 sm:$0xff]   ;;  %v140_v3 = vsub.s32 1, %v1233_v1 }
  0x71   :  { %557 = vmatpush1.bf16.msra.mxu1 %v868_v11  ;;  %v874_v18 = vld [vmem:[#allocation9 + $0x20] ss:$8 sps:$4 sm:$0xff]   ;;  %v875_v19 = vld [vmem:[#allocation9 + $0x34] ss:$8 sps:$4 sm:$0xff]   ;;  %v877_v22 = vld [vmem:[#allocation9 + $0x30] ss:$8 sps:$4 sm:$0xff]  }
  0x72   :  { %194 = vmatpush1.bf16.msra.mxu0 %v186_v8  ;;  %558 = vmatprep.subr.bf16.mxu1 %v869_v13  ;;  %v109_v20 = vld [vmem:[#allocation3 + $0x20] sm:$0xff]  ;;  %v110_v21 = vld [vmem:[#allocation3 + $0x28] sm:$0xff]  ;;  %v111_v28 = vld [vmem:[#allocation3 + $0x30] sm:$0xff]  ;;  %s792_s0 = sshll.u32 %s1088_s1, 4  ;;  %s793_s0 = int_to_ptr.vmem [resolvable:$true] %s792_s0 }
  0x73   :  { %v878_v23 = vld [vmem:[#allocation9 + $0x44] ss:$8 sps:$4 sm:$0xff]   ;;  %v123_v24 = vpack.c.bf16 %v110_v21, %v109_v20  ;;  %v880_v25 = vld [vmem:[#allocation9 + $0x40] ss:$8 sps:$4 sm:$0xff]   ;;  %v881_v26 = vld [vmem:[#allocation9 + $0x54] ss:$8 sps:$4 sm:$0xff]   ;;  %p1051_p7 = scmp.lt.s32.totalorder %s793_s0, %s793_s0 }
  0x74   :  { %v883_v27 = vld [vmem:[#allocation9 + $0x50] ss:$8 sps:$4 sm:$0xff]   ;;  %v112_v29 = vld [vmem:[#allocation3 + $0x38] sm:$0xff]  ;;  %v113_v35 = vld [vmem:[#allocation3 + $0x40] sm:$0xff]  ;;  %s1046_s13 = scalar_lea.vmem %s793_s0, 16  ;;  %s1050_s14 = scalar_lea.vmem %s793_s0, 32 }
  0x75   :  { %809 = vmatmul.mubr.msk.bf16.vlgmr.msra.gmra.mrb[0].mxu0 %vm159_vm1, %v121_v9  ;;  %559 = vmatpush1.bf16.msra.mxu1 %v871_v15  ;;  %v884_v30 = vld [vmem:[#allocation9 + $0x64] ss:$8 sps:$4 sm:$0xff]   ;;  %v124_v31 = vpack.c.bf16 %v112_v29, %v111_v28  ;;  %v886_v32 = vld [vmem:[#allocation9 + $0x60] ss:$8 sps:$4 sm:$0xff]   ;;  %v887_v33 = vld [vmem:[#allocation9 + $0x74] ss:$8 sps:$4 sm:$0xff]   ;;  %p1047_p6 = scmp.ne.s32.totalorder %s793_s0, %s1046_s13  ;;  %p1052_p8 = scmp.lt.s32.totalorder %s1050_s14, %s1046_s13 }
  0x76   :  { %233 = vmatprep.mubr.bf16.mxu0 %v1086_v0  ;;  %560 = vmatprep.subr.bf16.mxu1 %v872_v16  ;;  %v889_v34 = vld [vmem:[#allocation9 + $0x70] ss:$8 sps:$4 sm:$0xff]   ;;  %v890_v37 = vld [vmem:[#allocation9 + $0x84] ss:$8 sps:$4 sm:$0xff]   ;;  %v892_v39 = vld [vmem:[#allocation9 + $0x80] ss:$8 sps:$4 sm:$0xff]  }
  0x77   :  { %v114_v36 = vld [vmem:[#allocation3 + $0x48] sm:$0xff]  ;;  %v115_v42 = vld [vmem:[#allocation3 + $0x50] sm:$0xff]  ;;  %v116_v43 = vld [vmem:[#allocation3 + $0x58] sm:$0xff]  ;;  %p1053_p9 = por %p1052_p8, %p1051_p7 }
  0x78   :  { %v125_v38 = vpack.c.bf16 %v114_v36, %v113_v35  ;;  %v893_v40 = vld [vmem:[#allocation9 + $0x94] ss:$8 sps:$4 sm:$0xff]   ;;  %v895_v41 = vld [vmem:[#allocation9 + $0x90] ss:$8 sps:$4 sm:$0xff]   ;;  %v896_v44 = vld [vmem:[#allocation9 + $0xa4] ss:$8 sps:$4 sm:$0xff]   ;;  %v126_v45 = vpack.c.bf16 %v116_v43, %v115_v42 }
  0x79   :  { %561 = vmatpush1.bf16.msra.mxu1 %v874_v18  ;;  %v898_v46 = vld [vmem:[#allocation9 + $0xa0] ss:$8 sps:$4 sm:$0xff]   ;;  %v899_v47 = vld [vmem:[#allocation9 + $0xb4] ss:$8 sps:$4 sm:$0xff]   ;;  %v901_v48 = vld [vmem:[#allocation9 + $0xb0] ss:$8 sps:$4 sm:$0xff]   ;;  %p1054_p10 = pnand %p1053_p9, %p1047_p6 }
  0x7a   :  { %562 = vmatprep.subr.bf16.mxu1 %v875_v19  ;;  %v117_v49 = vld [vmem:[#allocation3 + $0x60] sm:$0xff]  ;;  %v118_v50 = vld [vmem:[#allocation3 + $0x68] sm:$0xff]  ;;  %v119_v55 = vld [vmem:[#allocation3 + $0x70] sm:$0xff] }
  0x7b   :  { %v902_v51 = vld [vmem:[#allocation9 + $0xc4] ss:$8 sps:$4 sm:$0xff]   ;;  %v127_v52 = vpack.c.bf16 %v118_v50, %v117_v49  ;;  %v904_v53 = vld [vmem:[#allocation9 + $0xc0] ss:$8 sps:$4 sm:$0xff]   ;;  %v905_v54 = vld [vmem:[#allocation9 + $0xd4] ss:$8 sps:$4 sm:$0xff]  }
  0x7c   :  { %v120_v56 = vld [vmem:[#allocation3 + $0x78] sm:$0xff]  ;;  %v907_v58 = vld [vmem:[#allocation9 + $0xd0] ss:$8 sps:$4 sm:$0xff]  }
  0x7d   :  { %810 = vmatmul.mubr.msk.bf16.gmra.mrb[4].mxu0 %vm159_vm1, %v122_v17  ;;  %563 = vmatpush1.bf16.msra.mxu1 %v877_v22  ;;  %v128_v57 = vpack.c.bf16 %v120_v56, %v119_v55  ;;  %v908_v59 = vld [vmem:[#allocation9 + $0xe4] ss:$8 sps:$4 sm:$0xff]   ;;  %v910_v60 = vld [vmem:[#allocation9 + $0xe0] ss:$8 sps:$4 sm:$0xff]   ;;  %v911_v61 = vld [vmem:[#allocation9 + $0xf4] ss:$8 sps:$4 sm:$0xff]  }
  0x7e   :  { %243 = vmatprep.mubr.bf16.mxu0 %v1086_v0  ;;  %564 = vmatprep.subr.bf16.mxu1 %v878_v23  ;;  %v913_v62 = vld [vmem:[#allocation9 + $0xf0] ss:$8 sps:$4 sm:$0xff]   ;;  %v132_v2 = vld [vmem:[#allocation8] sm:$0x3] }
  0x7f   :  { %v1243_v5 = vrot.slane %v132_v2, %v140_v3 }
  0x81   :  { %565 = vmatpush1.bf16.msra.mxu1 %v880_v25 }
  0x82   :  { %566 = vmatprep.subr.bf16.mxu1 %v881_v26 }
  0x85   :  { %811 = vmatmul.mubr.msk.bf16.gmra.mrb[8].mxu0 %vm159_vm1, %v123_v24  ;;  %567 = vmatpush1.bf16.msra.mxu1 %v883_v27 }
  0x86   :  { %253 = vmatprep.mubr.bf16.mxu0 %v1086_v0  ;;  %568 = vmatprep.subr.bf16.mxu1 %v884_v30 }
  0x89   :  { %569 = vmatpush1.bf16.msra.mxu1 %v886_v32 }
  0x8a   :  { %570 = vmatprep.subr.bf16.mxu1 %v887_v33 }
  0x8d   :  { %812 = vmatmul.mubr.msk.bf16.gmra.mrb[12].mxu0 %vm159_vm1, %v124_v31  ;;  %571 = vmatpush1.bf16.msra.mxu1 %v889_v34 }
  0x8e   :  { %263 = vmatprep.mubr.bf16.mxu0 %v1086_v0  ;;  %572 = vmatprep.subr.bf16.mxu1 %v890_v37 }
  0x91   :  { %573 = vmatpush1.bf16.msra.mxu1 %v892_v39 }
  0x92   :  { %574 = vmatprep.subr.bf16.mxu1 %v893_v40 }
  0x95   :  { %813 = vmatmul.mubr.msk.bf16.gmra.mrb[16].mxu0 %vm159_vm1, %v125_v38  ;;  %575 = vmatpush1.bf16.msra.mxu1 %v895_v41 }
  0x96   :  { %273 = vmatprep.mubr.bf16.mxu0 %v1086_v0  ;;  %576 = vmatprep.subr.bf16.mxu1 %v896_v44 }
  0x99   :  { %577 = vmatpush1.bf16.msra.mxu1 %v898_v46 }
  0x9a   :  { %578 = vmatprep.subr.bf16.mxu1 %v899_v47 }
  0x9d   :  { %814 = vmatmul.mubr.msk.bf16.gmra.mrb[20].mxu0 %vm159_vm1, %v126_v45  ;;  %579 = vmatpush1.bf16.msra.mxu1 %v901_v48 }
  0x9e   :  { %283 = vmatprep.mubr.bf16.mxu0 %v1086_v0  ;;  %580 = vmatprep.subr.bf16.mxu1 %v902_v51 }
  0xa1   :  { %581 = vmatpush1.bf16.msra.mxu1 %v904_v53 }
  0xa2   :  { %582 = vmatprep.subr.bf16.mxu1 %v905_v54 }
  0xa5   :  { %815 = vmatmul.mubr.msk.bf16.gmra.mrb[24].mxu0 %vm159_vm1, %v127_v52  ;;  %583 = vmatpush1.bf16.msra.mxu1 %v907_v58 }
  0xa6   :  { %293 = vmatprep.mubr.bf16.mxu0 %v1086_v0  ;;  %584 = vmatprep.subr.bf16.mxu1 %v908_v59  ;;  %v136_v0 = vsub.s32 0, %v1233_v1 }
  0xa8   :  { %v1239_v4 = vrot.slane %v132_v2, %v136_v0 }
  0xa9   :  { %585 = vmatpush1.bf16.msra.mxu1 %v910_v60 }
  0xaa   :  { %586 = vmatprep.subr.bf16.mxu1 %v911_v61 }
  0xad   :  { %816 = vmatmul.mubr.msk.bf16.gmra.mrb[28].mxu0 %vm159_vm1, %v128_v57  ;;  %587 = vmatpush1.bf16.msra.mxu1 %v913_v62 }
 0x148   :  { %v225_v6 = vpop.f32.mrb[0].mxu0 }
 0x149   :  { %v226_v7 = vadd.f32 %v225_v6, %v1239_v4  ;;  %v227_v8 = vpop.f32.mrb[1].mxu0 }
 0x14a   :  { %v228_v9 = vadd.f32 %v227_v8, %v1243_v5  ;;  %v229_v10 = vpop.f32.mrb[2].mxu0 }
 0x14b   :  { %v230_v11 = vadd.f32 %v229_v10, %v1239_v4  ;;  %v231_v12 = vpop.f32.mrb[3].mxu0  ;;  %v304_v14 = vmax.f32 %v226_v7, 0.0 }
 0x14c   :  { %v232_v13 = vadd.f32 %v231_v12, %v1243_v5  ;;  %v305_v16 = vmax.f32 %v228_v9, 0.0 }
 0x14d   :  { %v306_v15 = vmax.f32 %v230_v11, 0.0 }
 0x14e   :  { %v307_v17 = vmax.f32 %v232_v13, 0.0 }
 0x14f   :  { %v336_v18 = vpack.c.bf16 %v306_v15, %v304_v14 }
 0x150   :  { %v235_v19 = vpop.f32.mrb[4].mxu0  ;;  %v337_v20 = vpack.c.bf16 %v307_v17, %v305_v16 }
 0x151   :  { %v236_v21 = vadd.f32 %v235_v19, %v1239_v4  ;;  %v237_v22 = vpop.f32.mrb[5].mxu0 }
 0x152   :  { %v238_v23 = vadd.f32 %v237_v22, %v1243_v5  ;;  %v239_v24 = vpop.f32.mrb[6].mxu0  ;;  %588 = vmatprep.mubr.bf16.mxu1 %v337_v20 }
 0x153   :  { %v240_v25 = vadd.f32 %v239_v24, %v1239_v4  ;;  %v241_v26 = vpop.f32.mrb[7].mxu0  ;;  %589 = vmatmul.mubr.bf16.vlgmr.msra.gmra.mrb[0].mxu1 %v336_v18  ;;  %v308_v28 = vmax.f32 %v236_v21, 0.0 }
 0x154   :  { %v242_v27 = vadd.f32 %v241_v26, %v1243_v5  ;;  %v309_v30 = vmax.f32 %v238_v23, 0.0 }
 0x155   :  { %v310_v29 = vmax.f32 %v240_v25, 0.0 }
 0x156   :  { %v311_v31 = vmax.f32 %v242_v27, 0.0 }
 0x157   :  { %v338_v32 = vpack.c.bf16 %v310_v29, %v308_v28 }
 0x158   :  { %v339_v33 = vpack.c.bf16 %v311_v31, %v309_v30  ;;  %v245_v34 = vpop.f32.mrb[8].mxu0 }
 0x159   :  { %v246_v35 = vadd.f32 %v245_v34, %v1239_v4  ;;  %v247_v36 = vpop.f32.mrb[9].mxu0 }
 0x15a   :  { %v248_v37 = vadd.f32 %v247_v36, %v1243_v5  ;;  %v249_v38 = vpop.f32.mrb[10].mxu0  ;;  %598 = vmatprep.mubr.bf16.mxu1 %v339_v33 }
 0x15b   :  { %v250_v39 = vadd.f32 %v249_v38, %v1239_v4  ;;  %v251_v40 = vpop.f32.mrb[11].mxu0  ;;  %599 = vmatmul.mubr.bf16.gmra.mrb[4].mxu1 %v338_v32  ;;  %v312_v42 = vmax.f32 %v246_v35, 0.0 }
 0x15c   :  { %v252_v41 = vadd.f32 %v251_v40, %v1243_v5  ;;  %v313_v44 = vmax.f32 %v248_v37, 0.0 }
 0x15d   :  { %v314_v43 = vmax.f32 %v250_v39, 0.0 }
 0x15e   :  { %v315_v45 = vmax.f32 %v252_v41, 0.0 }
 0x15f   :  { %v340_v46 = vpack.c.bf16 %v314_v43, %v312_v42 }
 0x160   :  { %v341_v47 = vpack.c.bf16 %v315_v45, %v313_v44  ;;  %v255_v48 = vpop.f32.mrb[12].mxu0 }
 0x161   :  { %v256_v49 = vadd.f32 %v255_v48, %v1239_v4  ;;  %v257_v50 = vpop.f32.mrb[13].mxu0 }
 0x162   :  { %v258_v51 = vadd.f32 %v257_v50, %v1243_v5  ;;  %v259_v52 = vpop.f32.mrb[14].mxu0  ;;  %608 = vmatprep.mubr.bf16.mxu1 %v341_v47 }
 0x163   :  { %v260_v53 = vadd.f32 %v259_v52, %v1239_v4  ;;  %v261_v54 = vpop.f32.mrb[15].mxu0  ;;  %609 = vmatmul.mubr.bf16.gmra.mrb[8].mxu1 %v340_v46  ;;  %v316_v56 = vmax.f32 %v256_v49, 0.0 }
 0x164   :  { %v262_v55 = vadd.f32 %v261_v54, %v1243_v5  ;;  %v317_v58 = vmax.f32 %v258_v51, 0.0 }
 0x165   :  { %v318_v57 = vmax.f32 %v260_v53, 0.0 }
 0x166   :  { %v319_v59 = vmax.f32 %v262_v55, 0.0 }
 0x167   :  { %v342_v60 = vpack.c.bf16 %v318_v57, %v316_v56 }
 0x168   :  { %v343_v61 = vpack.c.bf16 %v319_v59, %v317_v58  ;;  %v265_v62 = vpop.f32.mrb[16].mxu0  ;;  %v1087_v59 = vmov 1966171168  }
 0x169   :  { %v266_v63 = vadd.f32 %v265_v62, %v1239_v4  ;;  %v267_v2 = vpop.f32.mrb[17].mxu0 }
 0x16a   :  { %v268_v6 = vadd.f32 %v267_v2, %v1243_v5  ;;  %v269_v7 = vpop.f32.mrb[18].mxu0  ;;  %618 = vmatprep.mubr.bf16.mxu1 %v343_v61  ;;  %v1277_v61 = vld.sshfl [vmem:[#allocation12] sm:$0x11 pattern:$0x75316420] }
 0x16b   :  { %v270_v8 = vadd.f32 %v269_v7, %v1239_v4  ;;  %v271_v9 = vpop.f32.mrb[19].mxu0  ;;  %619 = vmatmul.mubr.bf16.gmra.mrb[12].mxu1 %v342_v60  ;;  %v320_v11 = vmax.f32 %v266_v63, 0.0  ;;  %v730_v60 = vunpack.c.l.s4 %v1087_v59 }
 0x16c   :  { %v272_v10 = vadd.f32 %v271_v9, %v1243_v5  ;;  %v321_v13 = vmax.f32 %v268_v6, 0.0  ;;  %v384_v6 = vld [vmem:[#allocation11] sm:$0x3] }
 0x16d   :  { %v322_v12 = vmax.f32 %v270_v8, 0.0  ;;  %v731_v62 = vunpack.c.0.s8 %v730_v60  ;;  %v1289_v7 = vrot.slane %v384_v6, %v136_v0  ;;  %v1293_v8 = vrot.slane %v384_v6, %v140_v3 }
 0x16e   :  { %v323_v14 = vmax.f32 %v272_v10, 0.0 }
 0x16f   :  { %v344_v15 = vpack.c.bf16 %v322_v12, %v320_v11  ;;  %v1282_v63 = vsub.s32 %v731_v62, %v1233_v1 }
 0x170   :  { %v345_v16 = vpack.c.bf16 %v323_v14, %v321_v13  ;;  %v275_v17 = vpop.f32.mrb[20].mxu0 }
 0x171   :  { %v276_v18 = vadd.f32 %v275_v17, %v1239_v4  ;;  %v277_v19 = vpop.f32.mrb[21].mxu0 }
 0x172   :  { %v278_v20 = vadd.f32 %v277_v19, %v1243_v5  ;;  %v279_v21 = vpop.f32.mrb[22].mxu0  ;;  %628 = vmatprep.mubr.bf16.mxu1 %v345_v16 }
 0x173   :  { %v280_v22 = vadd.f32 %v279_v21, %v1239_v4  ;;  %v281_v23 = vpop.f32.mrb[23].mxu0  ;;  %629 = vmatmul.mubr.bf16.gmra.mrb[16].mxu1 %v344_v15  ;;  %v324_v25 = vmax.f32 %v276_v18, 0.0 }
 0x174   :  { %v282_v24 = vadd.f32 %v281_v23, %v1243_v5  ;;  %v325_v27 = vmax.f32 %v278_v20, 0.0 }
 0x175   :  { %v326_v26 = vmax.f32 %v280_v22, 0.0 }
 0x176   :  { %v327_v28 = vmax.f32 %v282_v24, 0.0 }
 0x177   :  { %v346_v29 = vpack.c.bf16 %v326_v26, %v324_v25 }
 0x178   :  { %v347_v30 = vpack.c.bf16 %v327_v28, %v325_v27  ;;  %v285_v31 = vpop.f32.mrb[24].mxu0 }
 0x179   :  { %v286_v32 = vadd.f32 %v285_v31, %v1239_v4  ;;  %v287_v33 = vpop.f32.mrb[25].mxu0 }
 0x17a   :  { %v288_v34 = vadd.f32 %v287_v33, %v1243_v5  ;;  %v289_v35 = vpop.f32.mrb[26].mxu0  ;;  %638 = vmatprep.mubr.bf16.mxu1 %v347_v30 }
 0x17b   :  { %v290_v36 = vadd.f32 %v289_v35, %v1239_v4  ;;  %v291_v37 = vpop.f32.mrb[27].mxu0  ;;  %639 = vmatmul.mubr.bf16.gmra.mrb[20].mxu1 %v346_v29  ;;  %v328_v39 = vmax.f32 %v286_v32, 0.0 }
 0x17c   :  { %v292_v38 = vadd.f32 %v291_v37, %v1243_v5  ;;  %v329_v41 = vmax.f32 %v288_v34, 0.0 }
 0x17d   :  { %v330_v40 = vmax.f32 %v290_v36, 0.0 }
 0x17e   :  { %v331_v42 = vmax.f32 %v292_v38, 0.0 }
 0x17f   :  { %v348_v43 = vpack.c.bf16 %v330_v40, %v328_v39 }
 0x180   :  { %v349_v44 = vpack.c.bf16 %v331_v42, %v329_v41  ;;  %v295_v45 = vpop.f32.mrb[28].mxu0 }
 0x181   :  { %v296_v46 = vadd.f32 %v295_v45, %v1239_v4  ;;  %v297_v47 = vpop.f32.mrb[29].mxu0 }
 0x182   :  { %v298_v48 = vadd.f32 %v297_v47, %v1243_v5  ;;  %v299_v49 = vpop.f32.mrb[30].mxu0  ;;  %648 = vmatprep.mubr.bf16.mxu1 %v349_v44 }
 0x183   :  { %v300_v50 = vadd.f32 %v299_v49, %v1239_v4  ;;  %v301_v51 = vpop.f32.mrb[31].mxu0  ;;  %649 = vmatmul.mubr.bf16.gmra.mrb[24].mxu1 %v348_v43  ;;  %v332_v53 = vmax.f32 %v296_v46, 0.0  ;;  %v728_v4 = vcombine.high %v1277_v61, %v1277_v61 }
 0x184   :  { %v302_v52 = vadd.f32 %v301_v51, %v1243_v5  ;;  %v333_v55 = vmax.f32 %v298_v48, 0.0  ;;  %v735_v5 = vrot.slane %v1277_v61, %v1282_v63 }
 0x185   :  { %v334_v54 = vmax.f32 %v300_v50, 0.0  ;;  %v742_v2 = vrot.slane %v728_v4, %v1282_v63 }
 0x186   :  { %v335_v56 = vmax.f32 %v302_v52, 0.0 }
 0x187   :  { %v350_v57 = vpack.c.bf16 %v334_v54, %v332_v53  ;;  %777 = vmatprep.mubr.bf16.mxu0 %v742_v2 }
 0x188   :  { %v351_v58 = vpack.c.bf16 %v335_v56, %v333_v55 }
 0x18a   :  { %658 = vmatprep.mubr.bf16.mxu1 %v351_v58 }
 0x18b   :  { %659 = vmatmul.mubr.bf16.gmra.mrb[28].mxu1 %v350_v57 }
 0x226   :  { %v590_v9 = vpop.f32.mrb[0].mxu1 }
 0x227   :  { %v591_v10 = vadd.f32 %v590_v9, %v1289_v7  ;;  %v592_v11 = vpop.f32.mrb[1].mxu1 }
 0x228   :  { %v593_v12 = vadd.f32 %v592_v11, %v1293_v8  ;;  %v594_v13 = vpop.f32.mrb[2].mxu1 }
 0x229   :  { %v595_v14 = vadd.f32 %v594_v13, %v1289_v7  ;;  %v596_v15 = vpop.f32.mrb[3].mxu1  ;;  %v669_v17 = vmax.f32 %v591_v10, 0.0 }
 0x22a   :  { %v597_v16 = vadd.f32 %v596_v15, %v1293_v8  ;;  %v670_v0 = vmax.f32 %v593_v12, 0.0 }
 0x22b   :  { %v671_v18 = vmax.f32 %v595_v14, 0.0 }
 0x22c   :  { %v672_v19 = vmax.f32 %v597_v16, 0.0 }
 0x22d   :  { %v702_v20 = vpack.c.bf16 %v671_v18, %v669_v17 }
 0x22e   :  { %v703_v1 = vpack.c.bf16 %v672_v19, %v670_v0  ;;  %v600_v3 = vpop.f32.mrb[4].mxu1 }
 0x22f   :  { %v601_v21 = vadd.f32 %v600_v3, %v1289_v7  ;;  %v602_v22 = vpop.f32.mrb[5].mxu1 }
 0x230   :  { %v603_v23 = vadd.f32 %v602_v22, %v1293_v8  ;;  %v604_v24 = vpop.f32.mrb[6].mxu1  ;;  %745 = vmatprep.subr.bf16.mxu0 %v703_v1 }
 0x231   :  { %v605_v25 = vadd.f32 %v604_v24, %v1289_v7  ;;  %v606_v26 = vpop.f32.mrb[7].mxu1  ;;  %746 = vmatpush1.bf16.xpose.msra.mxu0 %v702_v20  ;;  %v673_v28 = vmax.f32 %v601_v21, 0.0 }
 0x232   :  { %v607_v27 = vadd.f32 %v606_v26, %v1293_v8  ;;  %v674_v30 = vmax.f32 %v603_v23, 0.0 }
 0x233   :  { %v675_v29 = vmax.f32 %v605_v25, 0.0 }
 0x234   :  { %v676_v31 = vmax.f32 %v607_v27, 0.0 }
 0x235   :  { %v704_v32 = vpack.c.bf16 %v675_v29, %v673_v28 }
 0x236   :  { %v705_v33 = vpack.c.bf16 %v676_v31, %v674_v30  ;;  %v610_v34 = vpop.f32.mrb[8].mxu1 }
 0x237   :  { %v611_v35 = vadd.f32 %v610_v34, %v1289_v7  ;;  %v612_v36 = vpop.f32.mrb[9].mxu1 }
 0x238   :  { %v613_v37 = vadd.f32 %v612_v36, %v1293_v8  ;;  %v614_v38 = vpop.f32.mrb[10].mxu1  ;;  %747 = vmatprep.subr.bf16.mxu0 %v705_v33 }
 0x239   :  { %v615_v39 = vadd.f32 %v614_v38, %v1289_v7  ;;  %v616_v40 = vpop.f32.mrb[11].mxu1  ;;  %748 = vmatpush1.bf16.xpose.msra.mxu0 %v704_v32  ;;  %v677_v42 = vmax.f32 %v611_v35, 0.0 }
 0x23a   :  { %v617_v41 = vadd.f32 %v616_v40, %v1293_v8  ;;  %v678_v44 = vmax.f32 %v613_v37, 0.0 }
 0x23b   :  { %v679_v43 = vmax.f32 %v615_v39, 0.0 }
 0x23c   :  { %v680_v45 = vmax.f32 %v617_v41, 0.0 }
 0x23d   :  { %v706_v46 = vpack.c.bf16 %v679_v43, %v677_v42 }
 0x23e   :  { %v707_v47 = vpack.c.bf16 %v680_v45, %v678_v44  ;;  %v620_v48 = vpop.f32.mrb[12].mxu1 }
 0x23f   :  { %v621_v49 = vadd.f32 %v620_v48, %v1289_v7  ;;  %v622_v50 = vpop.f32.mrb[13].mxu1 }
 0x240   :  { %v623_v51 = vadd.f32 %v622_v50, %v1293_v8  ;;  %v624_v52 = vpop.f32.mrb[14].mxu1  ;;  %749 = vmatprep.subr.bf16.mxu0 %v707_v47 }
 0x241   :  { %v625_v53 = vadd.f32 %v624_v52, %v1289_v7  ;;  %v626_v54 = vpop.f32.mrb[15].mxu1  ;;  %750 = vmatpush1.bf16.xpose.msra.mxu0 %v706_v46  ;;  %v681_v56 = vmax.f32 %v621_v49, 0.0 }
 0x242   :  { %v627_v55 = vadd.f32 %v626_v54, %v1293_v8  ;;  %v682_v58 = vmax.f32 %v623_v51, 0.0 }
 0x243   :  { %v683_v57 = vmax.f32 %v625_v53, 0.0 }
 0x244   :  { %v684_v59 = vmax.f32 %v627_v55, 0.0 }
 0x245   :  { %v708_v60 = vpack.c.bf16 %v683_v57, %v681_v56 }
 0x246   :  { %v709_v62 = vpack.c.bf16 %v684_v59, %v682_v58  ;;  %v630_v4 = vpop.f32.mrb[16].mxu1 }
 0x247   :  { %v631_v2 = vadd.f32 %v630_v4, %v1289_v7  ;;  %v632_v6 = vpop.f32.mrb[17].mxu1 }
 0x248   :  { %v633_v9 = vadd.f32 %v632_v6, %v1293_v8  ;;  %v634_v10 = vpop.f32.mrb[18].mxu1  ;;  %751 = vmatprep.subr.bf16.mxu0 %v709_v62 }
 0x249   :  { %v635_v11 = vadd.f32 %v634_v10, %v1289_v7  ;;  %v636_v12 = vpop.f32.mrb[19].mxu1  ;;  %752 = vmatpush1.bf16.xpose.msra.mxu0 %v708_v60  ;;  %v685_v14 = vmax.f32 %v631_v2, 0.0 }
 0x24a   :  { %v637_v13 = vadd.f32 %v636_v12, %v1293_v8  ;;  %v686_v16 = vmax.f32 %v633_v9, 0.0 }
 0x24b   :  { %v687_v15 = vmax.f32 %v635_v11, 0.0 }
 0x24c   :  { %v688_v17 = vmax.f32 %v637_v13, 0.0 }
 0x24d   :  { %v710_v18 = vpack.c.bf16 %v687_v15, %v685_v14 }
 0x24e   :  { %v711_v0 = vpack.c.bf16 %v688_v17, %v686_v16  ;;  %v640_v19 = vpop.f32.mrb[20].mxu1 }
 0x24f   :  { %v641_v20 = vadd.f32 %v640_v19, %v1289_v7  ;;  %v642_v1 = vpop.f32.mrb[21].mxu1 }
 0x250   :  { %v643_v3 = vadd.f32 %v642_v1, %v1293_v8  ;;  %v644_v21 = vpop.f32.mrb[22].mxu1  ;;  %753 = vmatprep.subr.bf16.mxu0 %v711_v0 }
 0x251   :  { %v645_v22 = vadd.f32 %v644_v21, %v1289_v7  ;;  %v646_v23 = vpop.f32.mrb[23].mxu1  ;;  %754 = vmatpush1.bf16.xpose.msra.mxu0 %v710_v18  ;;  %v689_v25 = vmax.f32 %v641_v20, 0.0 }
 0x252   :  { %v647_v24 = vadd.f32 %v646_v23, %v1293_v8  ;;  %v690_v27 = vmax.f32 %v643_v3, 0.0 }
 0x253   :  { %v691_v26 = vmax.f32 %v645_v22, 0.0 }
 0x254   :  { %v692_v28 = vmax.f32 %v647_v24, 0.0 }
 0x255   :  { %v712_v29 = vpack.c.bf16 %v691_v26, %v689_v25 }
 0x256   :  { %v713_v30 = vpack.c.bf16 %v692_v28, %v690_v27  ;;  %v650_v31 = vpop.f32.mrb[24].mxu1 }
 0x257   :  { %v651_v32 = vadd.f32 %v650_v31, %v1289_v7  ;;  %v652_v33 = vpop.f32.mrb[25].mxu1 }
 0x258   :  { %v653_v34 = vadd.f32 %v652_v33, %v1293_v8  ;;  %v654_v35 = vpop.f32.mrb[26].mxu1  ;;  %755 = vmatprep.subr.bf16.mxu0 %v713_v30 }
 0x259   :  { %v655_v36 = vadd.f32 %v654_v35, %v1289_v7  ;;  %v656_v37 = vpop.f32.mrb[27].mxu1  ;;  %756 = vmatpush1.bf16.xpose.msra.mxu0 %v712_v29  ;;  %v693_v39 = vmax.f32 %v651_v32, 0.0 }
 0x25a   :  { %v657_v38 = vadd.f32 %v656_v37, %v1293_v8  ;;  %v694_v41 = vmax.f32 %v653_v34, 0.0 }
 0x25b   :  { %v695_v40 = vmax.f32 %v655_v36, 0.0 }
 0x25c   :  { %v696_v42 = vmax.f32 %v657_v38, 0.0 }
 0x25d   :  { %v714_v43 = vpack.c.bf16 %v695_v40, %v693_v39 }
 0x25e   :  { %v715_v44 = vpack.c.bf16 %v696_v42, %v694_v41  ;;  %v660_v45 = vpop.f32.mrb[28].mxu1 }
 0x25f   :  { %v661_v46 = vadd.f32 %v660_v45, %v1289_v7  ;;  %v662_v47 = vpop.f32.mrb[29].mxu1 }
 0x260   :  { %v663_v48 = vadd.f32 %v662_v47, %v1293_v8  ;;  %v664_v49 = vpop.f32.mrb[30].mxu1  ;;  %757 = vmatprep.subr.bf16.mxu0 %v715_v44 }
 0x261   :  { %v665_v50 = vadd.f32 %v664_v49, %v1289_v7  ;;  %v666_v51 = vpop.f32.mrb[31].mxu1  ;;  %758 = vmatpush1.bf16.xpose.msra.mxu0 %v714_v43  ;;  %v697_v53 = vmax.f32 %v661_v46, 0.0  ;;  %v719_v7 = vstv %s1351_s6 }
 0x262   :  { %v667_v52 = vadd.f32 %v666_v51, %v1293_v8  ;;  %v698_v55 = vmax.f32 %v663_v48, 0.0 }
 0x263   :  { %v699_v54 = vmax.f32 %v665_v50, 0.0 }
 0x264   :  { %v700_v56 = vmax.f32 %v667_v52, 0.0 }
 0x265   :  { %v716_v57 = vpack.c.bf16 %v699_v54, %v697_v53 }
 0x266   :  { %v717_v58 = vpack.c.bf16 %v700_v56, %v698_v55 }
 0x268   :  { %759 = vmatprep.subr.bf16.mxu0 %v717_v58 }
 0x269   :  { %760 = vmatpush1.bf16.xpose.msra.mxu0 %v716_v57 }
 0x270   :  { %778 = vmatmul.mubr.bf16.vlgmr.msra.gmra.mrb[32].mxu0 %v735_v5 }
 0x343   :  { %v779_v59 = vpop.f32.mrb[32].mxu0 }
 0x344   :  { %v780_v8 = vadd.f32 %v779_v59, %v719_v7  ;;  %v781_v60 = vpop.f32.mrb[33].mxu0 }
 0x345   :  { %v782_v62 = vpop.f32.mrb[34].mxu0 }
 0x346   :  { %785 = vst [vmem:[#allocation14] sm:$0x1] %v780_v8  ;;  %v783_v4 = vpop.f32.mrb[35].mxu0 }
 0x347   :  { %1057 = shalt.err (!%p1054_p10)
}
 0x348   :  { %s1058_s6 = scalar_lea.hbm %s1352_s7, 16 }
 0x349   :  { %p1059_p11 = scmp.ne.s32.totalorder %s1352_s7, %s1058_s6  ;;  %p1062_p12 = scmp.lt.u32.totalorder %s1058_s6, %s1352_s7 }
 0x34b   :  { %p1064_p13 = pnand %p1062_p12, %p1059_p11 }
 0x34d   :  { %1067 = shalt.err (!%p1064_p13)
}
 0x34e   :  { %795 = dma.vmem_to_hbm [thread:$0]  %s793_s0, 16, %s1352_s7, [#allocation5]  }
 0x34f   :  { %1076 = dma.done.wait [#allocation5], 16  }
 0x350   :  { %1077 = vsyncadd [#allocation5], 4294967280 }
 0x351   :  { %799 = vsyncpa [#allocation4], 1 }
 0x352   :  { %800 = vsyncpa [#allocation7], 1 }
 0x353   :  { %801 = vsyncpa [#allocation10], 1 }
 0x354   :  { %802 = vsyncpa [#allocation13], 1 }
 0x355   :  { %803 = vsyncpa [#allocation5], 1 }

</bundles_post_ra>
